<compile_context>
chip_gen: v6e
topology: v6e:2x2x1
jax: 0.10.0
libtpu: 0.0.40
codegen_flags: <defaults>
</compile_context>

<pallas_src>
import jax
import jax.numpy as jnp
from jax.experimental import pallas as pl
from jax.experimental.pallas import tpu as pltpu


def mydnn_kernel(x_ref, w1_ref, b1_ref, w2_ref, b2_ref, o_ref):
    # x_ref: (TB, S, F)  w1: (F, 256) pre-scaled by 1/S  b1: (1, 256)
    # w2: (1, 256)       b2: SMEM (1,)                   o_ref: (TB, 1)

    # pooled_output = mean(x, dim=1): the 1/S is folded into w1, so a plain sum suffices.
    pooled = jnp.sum(x_ref[...], axis=1)                                 # (TB, F)

    # fc1 on the MXU, bias + ReLU on the VPU.
    h = jnp.dot(pooled, w1_ref[...], preferred_element_type=jnp.float32)
    h = jnp.maximum(h + b1_ref[...], 0.0)                                # (TB, 256)

    # fc2 (out_features == 1): VPU multiply + lane reduction. An MXU matmul here would
    # fill only 1 of 128/256 result lanes and pay a full systolic fill/drain latency.
    y = jnp.sum(h * w2_ref[...], axis=-1, keepdims=True) + b2_ref[0]     # (TB, 1)

    # sigmoid: exp and the approximate reciprocal both run on the (otherwise idle) EUP slot.
    o_ref[...] = pl.reciprocal(1.0 + jnp.exp(-y), approx=True)


def mydnn_forward(x, w1_scaled, b1, w2, b2, *, batch_tile=None):
    """x: (B,S,F) f32; w1_scaled: (F,H) = fc1_weight.T / S; b1: (1,H); w2: (1,H); b2: (1,)."""
    B, S, F = x.shape
    H = w1_scaled.shape[1]

    # Batch-axis grid so the kernel scales past one VMEM block and (on v7x) can shard
    # across both TensorCores; at small B this is a single grid point (no loop overhead).
    # VMEM budget for the x tile (double-buffered) is 2 * TB * S * F * 4 bytes — size TB
    # against the 32 MiB scoped / 64 MiB physical VMEM of v7x, not the 128 MiB of v5e/v6e.
    if batch_tile is None:
        batch_tile = B if B <= 256 else 256
    tb = batch_tile
    grid = (pl.cdiv(B, tb),)
    b_padded = grid[0] * tb
    if b_padded != B:
        x = jnp.pad(x, ((0, b_padded - B), (0, 0), (0, 0)))

    # NOTE(perf): at production batch sizes, emit the result as a lane-major
    # (num_tiles, TB) slab (TB >= 128) and reshape in the wrapper so the final stores are
    # unmasked full-lane vst's; with a (TB, 1) block they are masked single-lane stores
    # (negligible at B=8, dominant once the kernel is gridded over a large batch).
    out = pl.pallas_call(
        mydnn_kernel,
        out_shape=jax.ShapeDtypeStruct((b_padded, 1), jnp.float32),
        grid=grid,
        in_specs=[
            pl.BlockSpec((tb, S, F), lambda i: (i, 0, 0)),   # x: tiled over batch
            pl.BlockSpec((F, H), lambda i: (0, 0)),          # w1 (resident every step)
            pl.BlockSpec((1, H), lambda i: (0, 0)),          # b1
            pl.BlockSpec((1, H), lambda i: (0, 0)),          # w2 lane-major row
            pl.BlockSpec(memory_space=pltpu.SMEM),           # b2 scalar in SMEM
        ],
        out_specs=pl.BlockSpec((tb, 1), lambda i: (i, 0)),
        compiler_params=pltpu.CompilerParams(
            dimension_semantics=("parallel",),               # megacore-shardable batch axis
        ),
    )(x, w1_scaled, b1, w2, b2)
    return out[:B]


def init_params(key, in_features, hidden=256):
    # Deterministic init mimicking nn.Linear's uniform(-1/sqrt(fan_in), +1/sqrt(fan_in)).
    k1, k2, k3, k4 = jax.random.split(key, 4)
    bound1 = 1.0 / jnp.sqrt(in_features)
    w1 = jax.random.uniform(k1, (in_features, hidden), jnp.float32, -bound1, bound1)
    b1 = jax.random.uniform(k2, (1, hidden), jnp.float32, -bound1, bound1)
    bound2 = 1.0 / jnp.sqrt(hidden)
    w2 = jax.random.uniform(k3, (1, hidden), jnp.float32, -bound2, bound2)  # PyTorch [out, in]
    b2 = jax.random.uniform(k4, (1,), jnp.float32, -bound2, bound2)
    return w1, b1, w2, b2


if __name__ == "__main__":
    key = jax.random.PRNGKey(0)
    k_x, k_p = jax.random.split(key)

    B, S, F, H = 8, 8, 32, 256      # batch, sequence length, feature dim (train_data.shape[2])
    x = jax.random.normal(k_x, (B, S, F), dtype=jnp.float32)
    w1, b1, w2, b2 = init_params(k_p, F, H)

    # Fold the 1/S of the sequence mean into w1 once at init time (free, unlike a per-call
    # pre-scale of activations).
    w1_scaled = w1 * (1.0 / S)

    out = mydnn_forward(x, w1_scaled, b1, w2, b2)
    out = jax.block_until_ready(out)

    # Plain-JAX reference of the original module semantics.
    pooled = jnp.mean(x, axis=1)
    h = jnp.maximum(pooled @ w1 + b1, 0.0)
    ref = jax.nn.sigmoid(h @ w2.T + b2)
    assert out.shape == (B, 1)
    # tolerance accounts for the EUP approximate reciprocal used in the in-kernel sigmoid
    assert jnp.allclose(out, ref, atol=5e-3), "mismatch vs reference"

    print("KERNEL_OK")
</pallas_src>

<mosaic_0001>
module attributes {stable_mosaic.version = 11 : i64} {
  func.func @mydnn_kernel(%arg0: i32, %arg1: memref<8x8x32xf32, #tpu.memory_space<vmem>>, %arg2: memref<32x256xf32, #tpu.memory_space<vmem>>, %arg3: memref<1x256xf32, #tpu.memory_space<vmem>>, %arg4: memref<1x256xf32, #tpu.memory_space<vmem>>, %arg5: memref<1xf32, #tpu.memory_space<smem>>, %arg6: memref<8x1xf32, #tpu.memory_space<vmem>>) attributes {dimension_semantics = [#tpu.dimension_semantics<parallel>], iteration_bounds = array<i64: 1>, scalar_prefetch = 0 : i64, scratch_operands = 0 : i64, tpu.core_type = #tpu.core_type<tc>, window_params = [{transform_indices = @transform_0, window_bounds = array<i64: 8, 8, 32>}, {pipeline_mode = #tpu.pipeline_mode<synchronous>, transform_indices = @transform_1, window_bounds = array<i64: 32, 256>}, {pipeline_mode = #tpu.pipeline_mode<synchronous>, transform_indices = @transform_2, window_bounds = array<i64: 1, 256>}, {pipeline_mode = #tpu.pipeline_mode<synchronous>, transform_indices = @transform_3, window_bounds = array<i64: 1, 256>}, {transform_indices = @transform_4, window_bounds = array<i64: 1>}, {transform_indices = @transform_5, window_bounds = array<i64: 8, 1>}]} {
    %c0 = arith.constant 0 : index
    %c0_0 = arith.constant 0 : index
    %c0_1 = arith.constant 0 : index
    %0 = vector.load %arg1[%c0, %c0_0, %c0_1] : memref<8x8x32xf32, #tpu.memory_space<vmem>>, vector<8x8x32xf32>
    %cst = arith.constant dense<0.000000e+00> : vector<8x32xf32>
    %1 = vector.multi_reduction <add>, %0, %cst [1] : vector<8x8x32xf32> to vector<8x32xf32>
    %c0_2 = arith.constant 0 : index
    %c0_3 = arith.constant 0 : index
    %2 = vector.load %arg2[%c0_2, %c0_3] : memref<32x256xf32, #tpu.memory_space<vmem>>, vector<32x256xf32>
    %cst_4 = arith.constant dense<0.000000e+00> : vector<8x256xf32>
    %3 = tpu.matmul %1, %2, %cst_4 {dimension_numbers = #tpu.dot_dimension_numbers<[1], [0], [0], [1], [0, 0, 1, 1], [], []>} : vector<8x32xf32>, vector<32x256xf32>, vector<8x256xf32> -> vector<8x256xf32>
    %c0_5 = arith.constant 0 : index
    %c0_6 = arith.constant 0 : index
    %4 = vector.load %arg3[%c0_5, %c0_6] : memref<1x256xf32, #tpu.memory_space<vmem>>, vector<1x256xf32>
    %5 = vector.broadcast %4 : vector<1x256xf32> to vector<8x256xf32>
    %6 = arith.addf %3, %5 : vector<8x256xf32>
    %cst_7 = arith.constant 0.000000e+00 : f32
    %7 = vector.broadcast %cst_7 : f32 to vector<8x256xf32>
    %8 = arith.maximumf %6, %7 : vector<8x256xf32>
    %c0_8 = arith.constant 0 : index
    %c0_9 = arith.constant 0 : index
    %9 = vector.load %arg4[%c0_8, %c0_9] : memref<1x256xf32, #tpu.memory_space<vmem>>, vector<1x256xf32>
    %10 = vector.broadcast %9 : vector<1x256xf32> to vector<8x256xf32>
    %11 = arith.mulf %8, %10 : vector<8x256xf32>
    %cst_10 = arith.constant dense<0.000000e+00> : vector<8xf32>
    %12 = vector.multi_reduction <add>, %11, %cst_10 [1] : vector<8x256xf32> to vector<8xf32>
    %13 = vector.shape_cast %12 : vector<8xf32> to vector<8x1xf32>
    %c0_11 = arith.constant 0 : index
    %14 = memref.load %arg5[%c0_11] : memref<1xf32, #tpu.memory_space<smem>>
    %15 = vector.broadcast %14 : f32 to vector<8x1xf32>
    %16 = arith.addf %13, %15 : vector<8x1xf32>
    %cst_12 = arith.constant 0.000000e+00 : f32
    %17 = vector.broadcast %cst_12 : f32 to vector<8x1xf32>
    %18 = arith.subf %17, %16 : vector<8x1xf32>
    %19 = math.exp %18 : vector<8x1xf32>
    %cst_13 = arith.constant 1.000000e+00 : f32
    %20 = vector.broadcast %cst_13 : f32 to vector<8x1xf32>
    %21 = arith.addf %20, %19 : vector<8x1xf32>
    %22 = tpu.reciprocal %21 {approx = true} : vector<8x1xf32> -> vector<8x1xf32>
    %c0_14 = arith.constant 0 : index
    %c0_15 = arith.constant 0 : index
    %23 = vector.load %arg6[%c0_14, %c0_15] : memref<8x1xf32, #tpu.memory_space<vmem>>, vector<8x1xf32>
    tpu.vector_store %arg6[%c0_14, %c0_15], %22 {strides = array<i32>} : memref<8x1xf32, #tpu.memory_space<vmem>>, vector<8x1xf32>,
    return
  }
  func.func @transform_0(%arg0: i32) -> (i32, i32, i32) {
    %c0_i32 = arith.constant 0 : i32
    %c0_i32_0 = arith.constant 0 : i32
    %c0_i32_1 = arith.constant 0 : i32
    return %arg0, %c0_i32, %c0_i32_0 : i32, i32, i32
  }
  func.func @transform_1(%arg0: i32) -> (i32, i32) {
    %c0_i32 = arith.constant 0 : i32
    %c0_i32_0 = arith.constant 0 : i32
    %c0_i32_1 = arith.constant 0 : i32
    return %c0_i32, %c0_i32_0 : i32, i32
  }
  func.func @transform_2(%arg0: i32) -> (i32, i32) {
    %c0_i32 = arith.constant 0 : i32
    %c0_i32_0 = arith.constant 0 : i32
    %c0_i32_1 = arith.constant 0 : i32
    return %c0_i32, %c0_i32_0 : i32, i32
  }
  func.func @transform_3(%arg0: i32) -> (i32, i32) {
    %c0_i32 = arith.constant 0 : i32
    %c0_i32_0 = arith.constant 0 : i32
    %c0_i32_1 = arith.constant 0 : i32
    return %c0_i32, %c0_i32_0 : i32, i32
  }
  func.func @transform_4(%arg0: i32) -> i32 {
    %c0_i32 = arith.constant 0 : i32
    %c0_i32_0 = arith.constant 0 : i32
    return %c0_i32 : i32
  }
  func.func @transform_5(%arg0: i32) -> (i32, i32) {
    %c0_i32 = arith.constant 0 : i32
    %c0_i32_0 = arith.constant 0 : i32
    return %arg0, %c0_i32 : i32, i32
  }
}

</mosaic_0001>

<bundles_post_ra>
// kernel: tpu_custom_call.1
= control target key start
LH: loop header
LB: loop body
LE: loop exit
PB: predicated region body
PF: predicated region fallthrough
CT: control target
= control target key end

     0   :  { %11 = vsyncpa [#allocation4], 0  ;;  %s386_s0 = inlined_call_operand.hbm [shape: f32[8,8,32], index: 0, kind: input, shape index: {}]   ;;  %s387_s1 = inlined_call_operand.hbm [shape: f32[32,256], index: 1, kind: input, shape index: {}]   ;;  %s388_s2 = inlined_call_operand.vmem [shape: f32[1,256], index: 2, kind: input, shape index: {}]   ;;  %s389_s3 = inlined_call_operand.vmem [shape: f32[1,256], index: 3, kind: input, shape index: {}]   ;;  %s390_s4 = inlined_call_operand.<no memory space> [shape: f32[1], index: 4, kind: input, shape index: {}]   ;;  %s391_s5 = inlined_call_operand.vmem [shape: f32[8,1], index: 5, kind: output, shape index: {}]  }
   0x1   :  { %12 = vsyncpa [#allocation6], 0  ;;  %s320_s18 = smov [#allocation3]  }
   0x2   :  { %s18_s19 = sshll.u32 %s320_s18, 4  ;;  %s19_s19 = int_to_ptr.vmem [resolvable:$true] %s18_s19 }
   0x3   :  { %s284_s20 = scalar_lea.vmem %s19_s19, 1024  ;;  %p289_p1 = scmp.lt.s32.totalorder %s19_s19, %s19_s19 }
   0x4   :  { %p285_p0 = scmp.ne.s32.totalorder %s19_s19, %s284_s20  ;;  %p290_p2 = scmp.lt.s32.totalorder %s284_s20, %s284_s20 }
   0x6   :  { %p291_p3 = por %p290_p2, %p289_p1 }
   0x8   :  { %p292_p4 = pnand %p291_p3, %p285_p0 }
   0xa   :  { %295 = shalt.err (!%p292_p4)
}
   0xb   :  { %s321_s21 = smov 128   ;;  %s322_s22 = smov 8  }
   0xc   :  { %24 = dma.hbm_to_vmem [thread:$0]  %s386_s0, 1024, %s19_s19, [#allocation4], %s321_s21, %s321_s21, %s322_s22  }
   0xd   :  { %s323_s25 = smov [#allocation5]  }
   0xe   :  { %s30_s26 = sshll.u32 %s323_s25, 4  ;;  %s31_s26 = int_to_ptr.vmem [resolvable:$true] %s30_s26 }
   0xf   :  { %s304_s27 = scalar_lea.vmem %s31_s26, 1024  ;;  %p309_p6 = scmp.lt.s32.totalorder %s31_s26, %s31_s26 }
  0x10   :  { %p305_p5 = scmp.ne.s32.totalorder %s31_s26, %s304_s27  ;;  %p310_p7 = scmp.lt.s32.totalorder %s304_s27, %s304_s27 }
  0x12   :  { %p311_p8 = por %p310_p7, %p309_p6 }
  0x14   :  { %p312_p9 = pnand %p311_p8, %p305_p5 }
  0x16   :  { %315 = shalt.err (!%p312_p9)
}
  0x17   :  { %s324_s28 = smov 256   ;;  %s325_s29 = smov 16  }
  0x18   :  { %36 = dma.hbm_to_vmem [thread:$0]  %s387_s1, 1024, %s31_s26, [#allocation6], %s324_s28, %s324_s28, %s325_s29  }
  0x19   :  { %316 = dma.done.wait [#allocation4], 1024  }
  0x1a   :  { %317 = vsyncadd [#allocation4], 4294966272 }
  0x1b   :  { %318 = dma.done.wait [#allocation6], 1024  }
  0x1c   :  { %319 = vsyncadd [#allocation6], 4294966272  ;;  %v326_v0 = vmov 0.0   ;;  %v121_v1 = vld [vmem:[#allocation5 + $0x38] sm:$0xff]  ;;  %v120_v2 = vld [vmem:[#allocation5 + $0x30] sm:$0xff]  ;;  %vm57_vm0 = vcmask 261120  }
  0x1d   :  { %222 = vmatprep.mubr.f32.mxu0 %v326_v0  ;;  %v119_v3 = vld [vmem:[#allocation5 + $0x28] sm:$0xff]  ;;  %182 = vmatprep.subr.mxu0 %v121_v1  ;;  %v118_v4 = vld [vmem:[#allocation5 + $0x20] sm:$0xff]  ;;  %v117_v5 = vld [vmem:[#allocation5 + $0x18] sm:$0xff]  ;;  %vm142_vm1 = vcmask 1041409   ;;  %vm144_vm2 = vcmask 1042434   ;;  %vm146_vm3 = vcmask 1043459  }
  0x1e   :  { %183 = vmatpush1.msra.mxu0 %v120_v2  ;;  %v116_v6 = vld [vmem:[#allocation5 + $0x10] sm:$0xff]  ;;  %v115_v7 = vld [vmem:[#allocation5 + $0x8] sm:$0xff]  ;;  %v49_v8 = vld [vmem:[#allocation3] sm:$0xff]  ;;  %vm148_vm4 = vcmask 1044484   ;;  %vm150_vm5 = vcmask 1045509   ;;  %vm152_vm6 = vcmask 1046534  }
  0x1f   :  { %184 = vmatprep.subr.mxu0 %v119_v3  ;;  %v50_v9 = vld [vmem:[#allocation3 + $0x8] sm:$0xff]  ;;  %v51_v10 = vld [vmem:[#allocation3 + $0x10] sm:$0xff]  ;;  %v52_v11 = vld [vmem:[#allocation3 + $0x18] sm:$0xff]  ;;  %v58_v12 = vsel %vm57_vm0, %v49_v8, 0.0  ;;  %vm154_vm7 = vcmask 1047559   ;;  %vm256_vm8 = vcmask 7168  }
  0x20   :  { %185 = vmatpush1.msra.mxu0 %v118_v4  ;;  %v53_v13 = vld [vmem:[#allocation3 + $0x20] sm:$0xff]  ;;  %v54_v14 = vld [vmem:[#allocation3 + $0x28] sm:$0xff]  ;;  %v55_v15 = vld [vmem:[#allocation3 + $0x30] sm:$0xff]  ;;  %v59_v16 = vrot.slane %v58_v12, 4  ;;  %v65_v17 = vsel %vm57_vm0, %v50_v9, 0.0  ;;  %v72_v18 = vsel %vm57_vm0, %v51_v10, 0.0 }
  0x21   :  { %186 = vmatprep.subr.mxu0 %v117_v5  ;;  %v114_v19 = vld [vmem:[#allocation5] sm:$0xff]  ;;  %v66_v20 = vrot.slane %v65_v17, 4  ;;  %v73_v21 = vrot.slane %v72_v18, 4  ;;  %v79_v22 = vsel %vm57_vm0, %v52_v11, 0.0  ;;  %v86_v23 = vsel %vm57_vm0, %v53_v13, 0.0  ;;  %v56_v24 = vld [vmem:[#allocation3 + $0x38] sm:$0xff] }
  0x22   :  { %187 = vmatpush1.msra.mxu0 %v116_v6  ;;  %v60_v25 = vadd.f32 %v59_v16, %v58_v12  ;;  %v80_v26 = vrot.slane %v79_v22, 4  ;;  %v87_v27 = vrot.slane %v86_v23, 4  ;;  %v93_v28 = vsel %vm57_vm0, %v54_v14, 0.0 }
  0x23   :  { %188 = vmatprep.subr.mxu0 %v115_v7  ;;  %v67_v29 = vadd.f32 %v66_v20, %v65_v17  ;;  %v74_v30 = vadd.f32 %v73_v21, %v72_v18  ;;  %v94_v31 = vrot.slane %v93_v28, 4  ;;  %v100_v32 = vsel %vm57_vm0, %v55_v15, 0.0 }
  0x24   :  { %189 = vmatpush1.msra.mxu0 %v114_v19  ;;  %v61_v33 = vrot.slane %v60_v25, 2  ;;  %v81_v34 = vadd.f32 %v80_v26, %v79_v22  ;;  %v88_v35 = vadd.f32 %v87_v27, %v86_v23  ;;  %v101_v36 = vrot.slane %v100_v32, 4  ;;  %v122_v19 = vld [vmem:[%s388_s2] sm:$0x3] }
  0x25   :  { %v68_v37 = vrot.slane %v67_v29, 2  ;;  %v75_v38 = vrot.slane %v74_v30, 2  ;;  %v95_v39 = vadd.f32 %v94_v31, %v93_v28  ;;  %v107_v40 = vsel %vm57_vm0, %v56_v24, 0.0  ;;  %v231_v24 = vld [vmem:[%s389_s3] sm:$0x3] }
  0x26   :  { %v62_v41 = vadd.f32 %v61_v33, %v60_v25  ;;  %v82_v42 = vrot.slane %v81_v34, 2  ;;  %v89_v43 = vrot.slane %v88_v35, 2  ;;  %v102_v44 = vadd.f32 %v101_v36, %v100_v32 }
  0x27   :  { %v69_v45 = vadd.f32 %v68_v37, %v67_v29  ;;  %v76_v46 = vadd.f32 %v75_v38, %v74_v30  ;;  %v96_v47 = vrot.slane %v95_v39, 2  ;;  %v108_v48 = vrot.slane %v107_v40, 4 }
  0x28   :  { %v63_v49 = vrot.slane %v62_v41, 1  ;;  %v83_v50 = vadd.f32 %v82_v42, %v81_v34  ;;  %v90_v51 = vadd.f32 %v89_v43, %v88_v35  ;;  %v103_v52 = vrot.slane %v102_v44, 2 }
  0x29   :  { %v70_v53 = vrot.slane %v69_v45, 1  ;;  %v77_v54 = vrot.slane %v76_v46, 1  ;;  %v97_v55 = vadd.f32 %v96_v47, %v95_v39  ;;  %v109_v56 = vadd.f32 %v108_v48, %v107_v40 }
  0x2a   :  { %v64_v57 = vadd.f32 %v63_v49, %v62_v41  ;;  %v84_v58 = vrot.slane %v83_v50, 1  ;;  %v91_v59 = vrot.slane %v90_v51, 1  ;;  %v104_v60 = vadd.f32 %v103_v52, %v102_v44 }
  0x2b   :  { %v71_v61 = vadd.f32 %v70_v53, %v69_v45  ;;  %v78_v62 = vadd.f32 %v77_v54, %v76_v46  ;;  %v98_v63 = vrot.slane %v97_v55, 1  ;;  %v110_v0 = vrot.slane %v109_v56, 2 }
  0x2c   :  { %v85_v1 = vadd.f32 %v84_v58, %v83_v50  ;;  %v92_v2 = vadd.f32 %v91_v59, %v90_v51  ;;  %v105_v3 = vrot.slane %v104_v60, 1  ;;  %v124_v16 = vlaneseq }
  0x2d   :  { %v99_v4 = vadd.f32 %v98_v63, %v97_v55  ;;  %v111_v5 = vadd.f32 %v110_v0, %v109_v56  ;;  %v143_v6 = vsel %vm142_vm1, %v71_v61, %v64_v57  ;;  %v249_v35 = vstv %s390_s4 }
  0x2e   :  { %v106_v7 = vadd.f32 %v105_v3, %v104_v60  ;;  %v145_v8 = vsel %vm144_vm2, %v78_v62, %v143_v6  ;;  %v125_v17 = vshrl.u32 %v124_v16, 7 }
  0x2f   :  { %v112_v9 = vrot.slane %v111_v5, 1  ;;  %v147_v10 = vsel %vm146_vm3, %v85_v1, %v145_v8 }
  0x30   :  { %v149_v11 = vsel %vm148_vm4, %v92_v2, %v147_v10  ;;  %v126_v18 = vsub.s32 0, %v125_v17  ;;  %v130_v20 = vsub.s32 1, %v125_v17 }
  0x31   :  { %v113_v12 = vadd.f32 %v112_v9, %v111_v5  ;;  %v151_v13 = vsel %vm150_vm5, %v99_v4, %v149_v11 }
  0x32   :  { %v153_v14 = vsel %vm152_vm6, %v106_v7, %v151_v13  ;;  %v127_v21 = vrot.slane %v122_v19, %v126_v18  ;;  %v131_v22 = vrot.slane %v122_v19, %v130_v20  ;;  %v236_v29 = vrot.slane %v231_v24, %v126_v18 }
  0x33   :  { %v155_v15 = vsel %vm154_vm7, %v113_v12, %v153_v14  ;;  %v240_v30 = vrot.slane %v231_v24, %v130_v20 }
  0x34   :  { %264 = vmatmul.mubr.msk.f32.vlgmr.msra.gmra.mxu0 %vm57_vm0, %v155_v15 }
  0xf4   :  { %v224_v23 = vpop.f32.mrf.mxu0 }
  0xf5   :  { %v225_v25 = vadd.f32 %v224_v23, %v127_v21 }
  0xf6   :  { %v226_v26 = vpop.f32.mrf.mxu0 }
  0xf7   :  { %v229_v27 = vmax.f32 %v225_v25, 0.0  ;;  %v227_v28 = vadd.f32 %v226_v26, %v131_v22 }
  0xf9   :  { %v230_v31 = vmax.f32 %v227_v28, 0.0  ;;  %v243_v32 = vmul.f32 %v236_v29, %v229_v27 }
  0xfb   :  { %v244_v33 = vmul.f32 %v240_v30, %v230_v31 }
  0xfd   :  { %v245_v34 = vadd.f32 %v244_v33, %v243_v32 }
  0xff   :  { %246 = vadd.xlane.f32.xlu0 %v245_v34 }
 0x188   :  { %v247_v36 = vpop.xlane.xlu0 %246 }
 0x189   :  { %v250_v37 = vadd.f32 %v249_v35, %v247_v36 }
 0x18b   :  { %v251_v38 = vsub.f32 0.0, %v250_v37 }
 0x18d   :  { %v252_v39 = vmul.f32 1.442695, %v251_v38 }
 0x18f   :  { %272 = vpow2.f32 %v252_v39 }
 0x19c   :  { %v273_v40 = vpop.eup %272 }
 0x19d   :  { %v254_v41 = vadd.f32 1.0, %v273_v40 }
 0x19f   :  { %274 = vrcp.f32 %v254_v41 }
 0x1ac   :  { %v275_v42 = vpop.eup %274 }
 0x1ad   :  { %257 = vst.msk [vmem:[%s391_s5] sm:$0xff] %vm256_vm8, %v275_v42 }
 0x1ae   :  { %262 = vsyncpa [#allocation4], 1 }
 0x1af   :  { %263 = vsyncpa [#allocation6], 1 }

</bundles_post_ra>
